<compile_context>
chip_gen: v5e
topology: v5e:2x2
jax: 0.10.0
libtpu: 0.0.40
codegen_flags: <defaults>
</compile_context>

<pallas_src>
import jax
import jax.numpy as jnp
from jax.experimental import pallas as pl
from jax.experimental.pallas import tpu as pltpu


def _skip_block_kernel(x_ref, wt_ref, b_ref, o_ref):
    # x_ref:  (C_in,  T)       channels x spatial tile (lanes = spatial)
    # wt_ref: (C_out, C_in)    transposed 1x1-conv weight
    # b_ref:  (C_out, 1)
    # o_ref:  (C_out + C_in, T)
    c_out = wt_ref.shape[0]
    x = x_ref[...]
    # main path: 1x1 conv (MXU, f32 accumulate) + bias + GELU (f32 math).
    y = jnp.dot(wt_ref[...], x, preferred_element_type=jnp.float32)
    y = y + b_ref[...]
    # TODO(synk): PyTorch nn.GELU defaults to exact (erf) GELU; tanh approx is
    # used here (and in the reference) since erf lowering is not guaranteed.
    y = jax.nn.gelu(y)
    # channel concat = two direct slice stores (no concatenated intermediate,
    # both stores are full-lane-width / unmasked along the 128-lane axis).
    o_ref[0:c_out, :] = y.astype(o_ref.dtype)
    o_ref[c_out:, :] = x.astype(o_ref.dtype)


def _pick_spatial_tile(hw, target=2048):
    """Largest tile <= target that divides hw and is a multiple of 128,
    or the full spatial extent if hw is small / has no such divisor."""
    if hw <= target:
        return hw
    t = (target // 128) * 128
    while t >= 128:
        if hw % t == 0:
            return t
        t -= 128
    return hw


def skip_block(x_nchw, w, b, *, t_spatial=None):
    """x_nchw: (N, C_in, H, W).  w: (C_in, C_out).  b: (C_out,).

    Returns (N, C_out + C_in, H, W), matching
    torch.cat([GELU(Conv1x1(x)), x], dim=1).
    """
    N, C_in, H, W = x_nchw.shape
    C_out = w.shape[1]
    C_tot = C_out + C_in
    HW = H * W
    if t_spatial is None:
        t_spatial = _pick_spatial_tile(HW)
    assert HW % t_spatial == 0, (HW, t_spatial)

    # NCHW is already channels-leading; only a free reshape, no HBM transpose.
    x3 = x_nchw.reshape(N, C_in, HW)
    wt = jnp.transpose(w)            # (C_out, C_in)  -- tiny, one-time
    b2 = b.reshape(C_out, 1)

    out3 = pl.pallas_call(
        _skip_block_kernel,
        out_shape=jax.ShapeDtypeStruct((N, C_tot, HW), x_nchw.dtype),
        grid_spec=pltpu.PrefetchScalarGridSpec(
            num_scalar_prefetch=0,
            grid=(N, HW // t_spatial),
            in_specs=[
                # batch dim squeezed; spatial tile rides the 128-lane axis.
                pl.BlockSpec((None, C_in, t_spatial), lambda n, s: (n, 0, s)),
                pl.BlockSpec((C_out, C_in), lambda n, s: (0, 0)),
                pl.BlockSpec((C_out, 1), lambda n, s: (0, 0)),
            ],
            out_specs=pl.BlockSpec((None, C_tot, t_spatial),
                                   lambda n, s: (n, 0, s)),
        ),
        compiler_params=pltpu.CompilerParams(
            dimension_semantics=("parallel", "parallel")),
    )(x3, wt, b2)

    return out3.reshape(N, C_tot, H, W)


def _reference(x_nchw, w, b):
    # Pure-JAX reference of the same forward pass (same GELU flavor).
    N, C_in, H, W = x_nchw.shape
    x_rows = jnp.transpose(x_nchw, (0, 2, 3, 1)).reshape(-1, C_in)
    y = jax.nn.gelu(x_rows @ w + b[None, :])
    out = jnp.concatenate([y, x_rows], axis=-1)
    return jnp.transpose(out.reshape(N, H, W, -1), (0, 3, 1, 2))


if __name__ == "__main__":
    key = jax.random.PRNGKey(0)
    k_x, k_w, k_b = jax.random.split(key, 3)

    N, C_in, H, W = 2, 4, 16, 16          # small NCHW input
    C_out = 8                              # main-path output channels

    x = jax.random.normal(k_x, (N, C_in, H, W), dtype=jnp.float32)
    w = jax.random.normal(k_w, (C_in, C_out), dtype=jnp.float32) * 0.1
    b = jax.random.normal(k_b, (C_out,), dtype=jnp.float32) * 0.1

    out = skip_block(x, w, b)
    out = jax.block_until_ready(out)

    ref = _reference(x, w, b)
    assert out.shape == (N, C_out + C_in, H, W), out.shape
    assert jnp.allclose(out, ref, atol=1e-5, rtol=1e-5), "mismatch vs reference"

    print("KERNEL_OK")
</pallas_src>

<mosaic_0001>
module attributes {stable_mosaic.version = 11 : i64} {
  func.func @_skip_block_kernel(%arg0: i32, %arg1: i32, %arg2: memref<1x4x256xf32, #tpu.memory_space<vmem>>, %arg3: memref<8x4xf32, #tpu.memory_space<vmem>>, %arg4: memref<8x1xf32, #tpu.memory_space<vmem>>, %arg5: memref<1x12x256xf32, #tpu.memory_space<vmem>>) attributes {dimension_semantics = [#tpu.dimension_semantics<parallel>, #tpu.dimension_semantics<parallel>], iteration_bounds = array<i64: 2, 1>, scalar_prefetch = 0 : i64, scratch_operands = 0 : i64, tpu.core_type = #tpu.core_type<tc>, window_params = [{transform_indices = @transform_0, window_bounds = array<i64: 1, 4, 256>}, {pipeline_mode = #tpu.pipeline_mode<synchronous>, transform_indices = @transform_1, window_bounds = array<i64: 8, 4>}, {pipeline_mode = #tpu.pipeline_mode<synchronous>, transform_indices = @transform_2, window_bounds = array<i64: 8, 1>}, {transform_indices = @transform_3, window_bounds = array<i64: 1, 12, 256>}]} {
    %c0 = arith.constant 0 : index
    %c0_0 = arith.constant 0 : index
    %c0_1 = arith.constant 0 : index
    %0 = vector.load %arg2[%c0, %c0_0, %c0_1] : memref<1x4x256xf32, #tpu.memory_space<vmem>>, vector<1x4x256xf32>
    %1 = vector.shape_cast %0 : vector<1x4x256xf32> to vector<4x256xf32>
    %c0_2 = arith.constant 0 : index
    %c0_3 = arith.constant 0 : index
    %2 = vector.load %arg3[%c0_2, %c0_3] : memref<8x4xf32, #tpu.memory_space<vmem>>, vector<8x4xf32>
    %cst = arith.constant dense<0.000000e+00> : vector<8x256xf32>
    %3 = tpu.matmul %2, %1, %cst {dimension_numbers = #tpu.dot_dimension_numbers<[1], [0], [0], [1], [0, 0, 1, 1], [], []>} : vector<8x4xf32>, vector<4x256xf32>, vector<8x256xf32> -> vector<8x256xf32>
    %c0_4 = arith.constant 0 : index
    %c0_5 = arith.constant 0 : index
    %4 = vector.load %arg4[%c0_4, %c0_5] : memref<8x1xf32, #tpu.memory_space<vmem>>, vector<8x1xf32>
    %5 = vector.broadcast %4 : vector<8x1xf32> to vector<8x256xf32>
    %6 = arith.addf %3, %5 : vector<8x256xf32>
    %7 = arith.mulf %6, %6 : vector<8x256xf32>
    %8 = arith.mulf %6, %7 : vector<8x256xf32>
    %cst_6 = arith.constant 4.471500e-02 : f32
    %9 = vector.broadcast %cst_6 : f32 to vector<8x256xf32>
    %10 = arith.mulf %9, %8 : vector<8x256xf32>
    %11 = arith.addf %6, %10 : vector<8x256xf32>
    %cst_7 = arith.constant 0.797884583 : f32
    %12 = vector.broadcast %cst_7 : f32 to vector<8x256xf32>
    %13 = arith.mulf %12, %11 : vector<8x256xf32>
    %14 = math.tanh %13 : vector<8x256xf32>
    %cst_8 = arith.constant 1.000000e+00 : f32
    %15 = vector.broadcast %cst_8 : f32 to vector<8x256xf32>
    %16 = arith.addf %15, %14 : vector<8x256xf32>
    %cst_9 = arith.constant 5.000000e-01 : f32
    %17 = vector.broadcast %cst_9 : f32 to vector<8x256xf32>
    %18 = arith.mulf %17, %16 : vector<8x256xf32>
    %19 = arith.mulf %6, %18 : vector<8x256xf32>
    %c0_10 = arith.constant 0 : index
    %c0_11 = arith.constant 0 : index
    %c0_12 = arith.constant 0 : index
    %20 = vector.load %arg5[%c0_10, %c0_11, %c0_12] : memref<1x12x256xf32, #tpu.memory_space<vmem>>, vector<1x8x256xf32>
    %21 = vector.shape_cast %20 : vector<1x8x256xf32> to vector<8x256xf32>
    %22 = vector.shape_cast %19 : vector<8x256xf32> to vector<1x8x256xf32>
    tpu.vector_store %arg5[%c0_10, %c0_11, %c0_12], %22 {strides = array<i32>} : memref<1x12x256xf32, #tpu.memory_space<vmem>>, vector<1x8x256xf32>,
    %c0_13 = arith.constant 0 : index
    %c8 = arith.constant 8 : index
    %c0_14 = arith.constant 0 : index
    %23 = vector.load %arg5[%c0_13, %c8, %c0_14] : memref<1x12x256xf32, #tpu.memory_space<vmem>>, vector<1x4x256xf32>
    %24 = vector.shape_cast %23 : vector<1x4x256xf32> to vector<4x256xf32>
    %25 = vector.shape_cast %1 : vector<4x256xf32> to vector<1x4x256xf32>
    tpu.vector_store %arg5[%c0_13, %c8, %c0_14], %25 {strides = array<i32>} : memref<1x12x256xf32, #tpu.memory_space<vmem>>, vector<1x4x256xf32>,
    return
  }
  func.func @transform_0(%arg0: i32, %arg1: i32) -> (i32, i32, i32) {
    %c0_i32 = arith.constant 0 : i32
    %c0_i32_0 = arith.constant 0 : i32
    return %arg0, %c0_i32, %arg1 : i32, i32, i32
  }
  func.func @transform_1(%arg0: i32, %arg1: i32) -> (i32, i32) {
    %c0_i32 = arith.constant 0 : i32
    %c0_i32_0 = arith.constant 0 : i32
    %c0_i32_1 = arith.constant 0 : i32
    return %c0_i32, %c0_i32_0 : i32, i32
  }
  func.func @transform_2(%arg0: i32, %arg1: i32) -> (i32, i32) {
    %c0_i32 = arith.constant 0 : i32
    %c0_i32_0 = arith.constant 0 : i32
    %c0_i32_1 = arith.constant 0 : i32
    return %c0_i32, %c0_i32_0 : i32, i32
  }
  func.func @transform_3(%arg0: i32, %arg1: i32) -> (i32, i32, i32) {
    %c0_i32 = arith.constant 0 : i32
    %c0_i32_0 = arith.constant 0 : i32
    return %arg0, %c0_i32, %arg1 : i32, i32, i32
  }
}

</mosaic_0001>

<bundles_post_ra>
// kernel: tpu_custom_call.1
= control target key start
LH: loop header
LB: loop body
LE: loop exit
PB: predicated region body
PF: predicated region fallthrough
CT: control target
= control target key end

     0   :  { %s477_s12 = smov 0   ;;  %s479_s13 = smov 0   ;;  %s522_s0 = inlined_call_operand.vmem [shape: f32[2,4,256], index: 0, kind: input, shape index: {}]   ;;  %s523_s1 = inlined_call_operand.vmem [shape: f32[8,4], index: 1, kind: input, shape index: {}]   ;;  %s524_s2 = inlined_call_operand.vmem [shape: f32[8,1], index: 2, kind: input, shape index: {}]   ;;  %s525_s3 = inlined_call_operand.vmem [shape: f32[2,12,256], index: 3, kind: output, shape index: {}]  }
   0x1   :  { %s481_s14 = smov 0  }
   0x2 LB: > { %s25_s15 = sadd.s32 1, %s450_s13  ;;  %p389_p0 = scmp.ge.s32.totalorder %s454_s14, 1  ;;  %s454_s14 = sphi %s481_s14, %s13_s14   ;;  %s450_s13 = sphi %s479_s13, %s527_s13   ;;  %s446_s12 = sphi %s477_s12, %s526_s12  }
   0x3   : > { %p27_p1 = scmp.ge.s32.totalorder %s25_s15, 2  ;;  %p158_p2 = scmp.lt.s32.totalorder %s454_s14, 3 }
   0x5   : > { %s529_s15 = smov (%p27_p1, %s25_s15), 0  ;;  %p159_p3 = pnand %p389_p0, %p158_p2 }
   0x6   : > { %p191_p4 = scmp.lt.s32.totalorder (!%p159_p3), %s446_s12, 1 }
   0x7   : > { %162 = sbr.rel (%p159_p3) target bundleno = 178 (0xb2), region = 32 }
   0xc   : > { %v212_v0 = vld [vmem:[%s524_s2] sm:$0xff]  ;;  %v456_v1 = vmov 0   ;;  %s531_s12 = smov (!%p191_p4, %s446_s12), 1  ;;  %vm226_vm0 = vcmask 1043456   ;;  %vm222_vm1 = vcmask 31744  }
   0xd   : > { %427 = vset.pattern.permute.xlu0 %v456_v1  ;;  %s400_s18 = sshll.u32 %s531_s12, 3  ;;  %v211_v3 = vld [vmem:[%s523_s1] sm:$0xff]  ;;  %s401_s24 = sshll.u32 %s531_s12, 5 }
   0xe   : > { %215 = vperm.xlu0 %427, %v212_v0   ;;  %s198_s21 = scalar_lea.vmem %s522_s0, %s400_s18  ;;  %s507_s27 = scalar_lea.vmem %s525_s3, %s401_s24 }
   0xf   : > { %v210_v2 = vld [vmem:[%s198_s21] sm:$0xff] }
  0x10   : > { %219 = vst [vmem:[#allocation1] ss:$2 sm:$0xff] %v210_v2 }
  0x17   : > { %v220_v4 = vld.sshfl [vmem:[#allocation1] sm:$0xff pattern:$0x75316420]  ;;  %v221_v5 = vld.sshfl [vmem:[#allocation1 + $0x8] sm:$0xff pattern:$0x75316420] }
  0x18   : > { %394 = vmatpush.msk.msra.mxu0 %vm226_vm0, %v220_v4  ;;  %396 = vmatpush.msk.msra.mxu1 %vm226_vm0, %v221_v5  ;;  %291 = vst [vmem:[#allocation1] ss:$2 sm:$0xff] %v210_v2 }
  0x19   : > { %395 = vmatmul.msk.f32.vlgmr.msra.gmra.mxu0 %vm222_vm1, %v211_v3  ;;  %397 = vmatmul.msk.f32.vlgmr.msra.gmra.mxu1 %vm222_vm1, %v211_v3 }
  0x1f   : > { %v292_v6 = vld.sshfl [vmem:[#allocation1] sm:$0xff pattern:$0x75316420]  ;;  %v293_v7 = vld.sshfl [vmem:[#allocation1 + $0x8] sm:$0xff pattern:$0x75316420] }
  0x20   : > { %296 = vst [vmem:[%s507_s27 + $0x10] sm:$0xf] %v292_v6 }
  0x21   : > { %297 = vst [vmem:[%s507_s27 + $0x18] sm:$0xf] %v293_v7 }
  0x80   : > { %v216_v8 = vpop.permute.xlu0 %215 }
  0x96   : > { %v248_v9 = vpop.f32.mrf.mxu0  ;;  %v268_v10 = vpop.f32.mrf.mxu1 }
  0x97   : > { %v249_v11 = vadd.f32 %v248_v9, %v216_v8  ;;  %v269_v12 = vadd.f32 %v268_v10, %v216_v8 }
  0x99   : > { %v271_v13 = vmul.f32 %v249_v11, %v249_v11  ;;  %v272_v14 = vmul.f32 %v269_v12, %v269_v12 }
  0x9b   : > { %v273_v15 = vmul.f32 %v271_v13, %v249_v11  ;;  %v274_v16 = vmul.f32 %v272_v14, %v269_v12 }
  0x9d   : > { %v275_v17 = vmul.f32 0.044715, %v273_v15  ;;  %v276_v18 = vmul.f32 0.044715, %v274_v16 }
  0x9f   : > { %v277_v19 = vadd.f32 %v275_v17, %v249_v11  ;;  %v278_v20 = vadd.f32 %v276_v18, %v269_v12 }
  0xa1   : > { %v279_v21 = vmul.f32 0.7978846, %v277_v19  ;;  %v280_v22 = vmul.f32 0.7978846, %v278_v20 }
  0xa3   : > { %428 = vtanh.f32 %v279_v21 }
  0xa4   : > { %430 = vtanh.f32 %v280_v22 }
  0xa9   : > { %v429_v23 = vpop.eup %428 }
  0xaa   : > { %v431_v24 = vpop.eup %430  ;;  %v283_v25 = vadd.f32 1.0, %v429_v23 }
  0xab   : > { %v284_v26 = vadd.f32 1.0, %v431_v24 }
  0xac   : > { %v285_v27 = vmul.f32 0.5, %v283_v25 }
  0xad   : > { %v286_v28 = vmul.f32 0.5, %v284_v26 }
  0xae   : > { %v287_v29 = vmul.f32 %v285_v27, %v249_v11 }
  0xaf   : > { %v288_v30 = vmul.f32 %v286_v28, %v269_v12 }
  0xb0   : > { %289 = vst [vmem:[%s507_s27] sm:$0xff] %v287_v29 }
  0xb1   : > { %290 = vst [vmem:[%s507_s27 + $0x8] sm:$0xff] %v288_v30 }
  0xb2 PF: > { %s13_s14 = sadd.s32 1, %s454_s14   ;;  %s526_s12 = smov %s450_s13 }
  0xb3   : > { %p10_p5 = scmp.ge.s32.totalorder %s13_s14, 4   ;;  %s527_s13 = smov %s529_s15 }
  0xb5   :  { %12 = sbr.rel (!%p10_p5) target bundleno = 2 (0x2), region = 62 }

</bundles_post_ra>
